<compile_context>
chip_gen: v7x
topology: tpu7x:2x2x1
jax: 0.10.0
libtpu: 0.0.40
codegen_flags: <defaults>
</compile_context>

<pallas_src>
import functools
import math

import jax
import jax.numpy as jnp
import numpy as np
from jax.experimental import pallas as pl
from jax.experimental.pallas import tpu as pltpu

_TWO_PI = 2.0 * math.pi


def _qembed_kernel(ids_ref, phase_ref, amp_ref, out_r_ref, out_i_ref, *,
                   resolution):
    ids = ids_ref[...]                                    # (TM, 1) int32
    tm = ids.shape[0]
    vocab = phase_ref.shape[0]

    # --- embedding gathers on the MXU: one_hot(ids) @ table ----------------
    one_hot = (jax.lax.broadcasted_iota(jnp.int32, (tm, vocab), 1) == ids
               ).astype(jnp.float32)                      # (TM, V)
    phases = jnp.dot(one_hot, phase_ref[...],
                     preferred_element_type=jnp.float32)  # (TM, D)
    amps = jnp.dot(one_hot, amp_ref[...],
                   preferred_element_type=jnp.float32)    # (TM, D)

    # --- FastPhaseProcessor.fast_phase_transform ----------------------------
    # sin_table[k] = sin(k * 2pi/(R-1)), idx = floor(phase/(2pi)*(R-1)).
    # The lookup is reproduced by recomputing sin/cos at the quantized angle
    # (identical to the table up to float rounding) -- avoids a per-element
    # gather inside the kernel.
    idx = jnp.clip(jnp.floor(phases * ((resolution - 1) / _TWO_PI)),
                   0.0, float(resolution - 1))
    ang = idx * (_TWO_PI / (resolution - 1))
    cos_p = jnp.cos(ang)
    sin_p = jnp.sin(ang)

    # --- complex amplitude + rsqrt renormalisation --------------------------
    real = amps * cos_p
    imag = amps * sin_p
    inv_norm = jax.lax.rsqrt(real * real + imag * imag + 1e-8)
    out_r_ref[...] = real * inv_norm
    out_i_ref[...] = imag * inv_norm


def _pick_tile_m(n_rows, max_tile=512):
    """Largest multiple-of-8 row tile <= max_tile that keeps grid >= 2."""
    tm = min(max_tile, max(8, n_rows // 2))
    tm = max(8, (tm // 8) * 8)
    return tm


@functools.partial(jax.jit, static_argnames=("tile_m", "resolution"))
def _quantum_embedding_impl(token_ids, phase_patterns, amplitude, *,
                            tile_m, resolution):
    orig_shape = token_ids.shape
    vocab, dim = phase_patterns.shape

    ids = token_ids.reshape(-1).astype(jnp.int32)
    rows = ids.shape[0]
    padded = pl.cdiv(rows, tile_m) * tile_m
    ids = jnp.pad(ids, (0, padded - rows))                # pad with token 0
    ids2d = ids.reshape(padded, 1)

    grid = (padded // tile_m,)
    ids_spec = pl.BlockSpec((tile_m, 1), lambda i: (i, 0))
    table_spec = pl.BlockSpec((vocab, dim), lambda i: (0, 0))   # resident
    out_spec = pl.BlockSpec((tile_m, dim), lambda i: (i, 0))

    # TODO(synk): for production-size vocabularies (e.g. 8192 x 512) the
    # resident-table + one-hot gather should be replaced by a scalar-prefetch
    # per-row DMA gather; at these shapes the fused form is simpler and fits
    # VMEM easily.
    out_r, out_i = pl.pallas_call(
        functools.partial(_qembed_kernel, resolution=resolution),
        out_shape=(jax.ShapeDtypeStruct((padded, dim), jnp.float32),
                   jax.ShapeDtypeStruct((padded, dim), jnp.float32)),
        grid_spec=pltpu.PrefetchScalarGridSpec(
            num_scalar_prefetch=0,
            grid=grid,
            in_specs=[ids_spec, table_spec, table_spec],
            out_specs=[out_spec, out_spec],
        ),
        compiler_params=pltpu.CompilerParams(
            dimension_semantics=("parallel",)),
    )(ids2d, phase_patterns.astype(jnp.float32),
      amplitude.astype(jnp.float32))

    out_r = out_r[:rows].reshape(*orig_shape, dim)
    out_i = out_i[:rows].reshape(*orig_shape, dim)
    return out_r, out_i


def quantum_embedding(token_ids, phase_patterns, amplitude, *,
                      resolution=1024, max_tile=512):
    n_rows = int(np.prod(token_ids.shape))
    tile_m = _pick_tile_m(n_rows, max_tile)
    return _quantum_embedding_impl(token_ids, phase_patterns, amplitude,
                                   tile_m=tile_m, resolution=resolution)


def _reference(token_ids, phase_patterns, amplitude, sin_table, cos_table,
               resolution):
    """Pure-JAX reference mirroring the PyTorch forward (real table lookup)."""
    phases = jnp.take(phase_patterns, token_ids, axis=0)
    amps = jnp.take(amplitude, token_ids, axis=0)
    idx = (phases / (2.0 * math.pi) * (resolution - 1)).astype(jnp.int32)
    idx = jnp.clip(idx, 0, resolution - 1)
    sin_p = jnp.take(sin_table, idx)
    cos_p = jnp.take(cos_table, idx)
    real = amps * cos_p
    imag = amps * sin_p
    norm = jax.lax.rsqrt(real ** 2 + imag ** 2 + 1e-8)
    return real * norm, imag * norm


if __name__ == "__main__":
    batch, seq = 2, 8
    vocab_size, embed_dim, resolution = 256, 128, 1024

    key = jax.random.PRNGKey(0)
    k_amp, k_ids = jax.random.split(key)

    # token_phase_patterns[i] = linspace(0, 2*pi*(i+1)/V, D)
    ends = (2.0 * math.pi) * (jnp.arange(vocab_size, dtype=jnp.float32) + 1.0) \
        / vocab_size
    ramp = jnp.linspace(0.0, 1.0, embed_dim, dtype=jnp.float32)
    phase_patterns = ends[:, None] * ramp[None, :]                 # (V, D)

    amplitude = jax.random.normal(k_amp, (vocab_size, embed_dim),
                                  jnp.float32) * 0.02               # (V, D)
    token_ids = jax.random.randint(k_ids, (batch, seq), 0, vocab_size,
                                   dtype=jnp.int32)

    # FastPhaseProcessor lookup tables (only needed by the reference).
    sin_table = jnp.sin(jnp.linspace(0.0, 2.0 * math.pi, resolution,
                                     dtype=jnp.float32))
    cos_table = jnp.cos(jnp.linspace(0.0, 2.0 * math.pi, resolution,
                                     dtype=jnp.float32))

    out_r, out_i = quantum_embedding(token_ids, phase_patterns, amplitude,
                                     resolution=resolution)
    jax.block_until_ready((out_r, out_i))

    ref_r, ref_i = _reference(token_ids, phase_patterns, amplitude,
                              sin_table, cos_table, resolution)
    np.testing.assert_allclose(np.asarray(out_r), np.asarray(ref_r),
                               rtol=2e-2, atol=2e-2)
    np.testing.assert_allclose(np.asarray(out_i), np.asarray(ref_i),
                               rtol=2e-2, atol=2e-2)

    print("KERNEL_OK")
</pallas_src>

<mosaic_0001>
module attributes {stable_mosaic.version = 11 : i64} {
  func.func @_qembed_kernel(%arg0: i32, %arg1: memref<8x1xi32, #tpu.memory_space<vmem>>, %arg2: memref<256x128xf32, #tpu.memory_space<vmem>>, %arg3: memref<256x128xf32, #tpu.memory_space<vmem>>, %arg4: memref<8x128xf32, #tpu.memory_space<vmem>>, %arg5: memref<8x128xf32, #tpu.memory_space<vmem>>) attributes {dimension_semantics = [#tpu.dimension_semantics<parallel>], iteration_bounds = array<i64: 2>, scalar_prefetch = 0 : i64, scratch_operands = 0 : i64, tpu.core_type = #tpu.core_type<tc>, window_params = [{transform_indices = @transform_0, window_bounds = array<i64: 8, 1>}, {pipeline_mode = #tpu.pipeline_mode<synchronous>, transform_indices = @transform_1, window_bounds = array<i64: 256, 128>}, {pipeline_mode = #tpu.pipeline_mode<synchronous>, transform_indices = @transform_2, window_bounds = array<i64: 256, 128>}, {transform_indices = @transform_3, window_bounds = array<i64: 8, 128>}, {transform_indices = @transform_4, window_bounds = array<i64: 8, 128>}]} {
    %c0 = arith.constant 0 : index
    %c0_0 = arith.constant 0 : index
    %0 = vector.load %arg1[%c0, %c0_0] : memref<8x1xi32, #tpu.memory_space<vmem>>, vector<8x1xi32>
    %1 = tpu.iota {dimensions = array<i32: 1>} : vector<8x256xi32>
    %2 = vector.broadcast %0 : vector<8x1xi32> to vector<8x256xi32>
    %3 = arith.cmpi eq, %1, %2 : vector<8x256xi32>
    %4 = arith.extui %3 : vector<8x256xi1> to vector<8x256xi32>
    %5 = arith.sitofp %4 : vector<8x256xi32> to vector<8x256xf32>
    %c0_1 = arith.constant 0 : index
    %c0_2 = arith.constant 0 : index
    %6 = vector.load %arg2[%c0_1, %c0_2] : memref<256x128xf32, #tpu.memory_space<vmem>>, vector<256x128xf32>
    %cst = arith.constant dense<0.000000e+00> : vector<8x128xf32>
    %7 = tpu.matmul %5, %6, %cst {dimension_numbers = #tpu.dot_dimension_numbers<[1], [0], [0], [1], [0, 0, 1, 1], [], []>} : vector<8x256xf32>, vector<256x128xf32>, vector<8x128xf32> -> vector<8x128xf32>
    %c0_3 = arith.constant 0 : index
    %c0_4 = arith.constant 0 : index
    %8 = vector.load %arg3[%c0_3, %c0_4] : memref<256x128xf32, #tpu.memory_space<vmem>>, vector<256x128xf32>
    %cst_5 = arith.constant dense<0.000000e+00> : vector<8x128xf32>
    %9 = tpu.matmul %5, %8, %cst_5 {dimension_numbers = #tpu.dot_dimension_numbers<[1], [0], [0], [1], [0, 0, 1, 1], [], []>} : vector<8x256xf32>, vector<256x128xf32>, vector<8x128xf32> -> vector<8x128xf32>
    %cst_6 = arith.constant 162.815506 : f32
    %10 = vector.broadcast %cst_6 : f32 to vector<8x128xf32>
    %11 = arith.mulf %7, %10 : vector<8x128xf32>
    %12 = math.floor %11 : vector<8x128xf32>
    %cst_7 = arith.constant 0.000000e+00 : f32
    %cst_8 = arith.constant 1.023000e+03 : f32
    %13 = vector.broadcast %cst_7 : f32 to vector<8x128xf32>
    %14 = arith.maximumf %13, %12 : vector<8x128xf32>
    %15 = vector.broadcast %cst_8 : f32 to vector<8x128xf32>
    %16 = arith.minimumf %15, %14 : vector<8x128xf32>
    %cst_9 = arith.constant 0.00614192104 : f32
    %17 = vector.broadcast %cst_9 : f32 to vector<8x128xf32>
    %18 = arith.mulf %16, %17 : vector<8x128xf32>
    %19 = math.cos %18 : vector<8x128xf32>
    %20 = math.sin %18 : vector<8x128xf32>
    %21 = arith.mulf %9, %19 : vector<8x128xf32>
    %22 = arith.mulf %9, %20 : vector<8x128xf32>
    %23 = arith.mulf %21, %21 : vector<8x128xf32>
    %24 = arith.mulf %22, %22 : vector<8x128xf32>
    %25 = arith.addf %23, %24 : vector<8x128xf32>
    %cst_10 = arith.constant 9.99999993E-9 : f32
    %26 = vector.broadcast %cst_10 : f32 to vector<8x128xf32>
    %27 = arith.addf %25, %26 : vector<8x128xf32>
    %28 = math.rsqrt %27 : vector<8x128xf32>
    %29 = arith.mulf %21, %28 : vector<8x128xf32>
    %c0_11 = arith.constant 0 : index
    %c0_12 = arith.constant 0 : index
    %30 = vector.load %arg4[%c0_11, %c0_12] : memref<8x128xf32, #tpu.memory_space<vmem>>, vector<8x128xf32>
    tpu.vector_store %arg4[%c0_11, %c0_12], %29 {strides = array<i32>} : memref<8x128xf32, #tpu.memory_space<vmem>>, vector<8x128xf32>,
    %31 = arith.mulf %22, %28 : vector<8x128xf32>
    %c0_13 = arith.constant 0 : index
    %c0_14 = arith.constant 0 : index
    %32 = vector.load %arg5[%c0_13, %c0_14] : memref<8x128xf32, #tpu.memory_space<vmem>>, vector<8x128xf32>
    tpu.vector_store %arg5[%c0_13, %c0_14], %31 {strides = array<i32>} : memref<8x128xf32, #tpu.memory_space<vmem>>, vector<8x128xf32>,
    return
  }
  func.func @transform_0(%arg0: i32) -> (i32, i32) {
    %c0_i32 = arith.constant 0 : i32
    %c0_i32_0 = arith.constant 0 : i32
    return %arg0, %c0_i32 : i32, i32
  }
  func.func @transform_1(%arg0: i32) -> (i32, i32) {
    %c0_i32 = arith.constant 0 : i32
    %c0_i32_0 = arith.constant 0 : i32
    %c0_i32_1 = arith.constant 0 : i32
    return %c0_i32, %c0_i32_0 : i32, i32
  }
  func.func @transform_2(%arg0: i32) -> (i32, i32) {
    %c0_i32 = arith.constant 0 : i32
    %c0_i32_0 = arith.constant 0 : i32
    %c0_i32_1 = arith.constant 0 : i32
    return %c0_i32, %c0_i32_0 : i32, i32
  }
  func.func @transform_3(%arg0: i32) -> (i32, i32) {
    %c0_i32 = arith.constant 0 : i32
    %c0_i32_0 = arith.constant 0 : i32
    return %arg0, %c0_i32 : i32, i32
  }
  func.func @transform_4(%arg0: i32) -> (i32, i32) {
    %c0_i32 = arith.constant 0 : i32
    %c0_i32_0 = arith.constant 0 : i32
    return %arg0, %c0_i32 : i32, i32
  }
}

</mosaic_0001>

<bundles_post_ra>
// kernel: _quantum_embedding_impl.1
= control target key start
LH: loop header
LB: loop body
LE: loop exit
PB: predicated region body
PF: predicated region fallthrough
CT: control target
= control target key end

     0   :  { %10 = vsyncpa [#allocation3], 0  ;;  %s1499_s0 = inlined_call_operand.vmem [shape: s32[16,1], index: 0, kind: input, shape index: {}]   ;;  %s1500_s1 = inlined_call_operand.hbm [shape: f32[256,128], index: 1, kind: input, shape index: {}]   ;;  %s1501_s2 = inlined_call_operand.hbm [shape: f32[256,128], index: 2, kind: input, shape index: {}]   ;;  %s1502_s3 = inlined_call_operand.hbm [shape: f32[16,128], index: 3, kind: output, shape index: {0}]   ;;  %s1503_s4 = inlined_call_operand.hbm [shape: f32[16,128], index: 4, kind: output, shape index: {1}]  }
   0x1   :  { %11 = vsyncpa [#allocation6], 0 }
   0x2   :  { %12 = vsyncpa [#allocation4], 0 }
   0x3   :  { %14 = vsyncpa [#allocation4 + $0x1], 0 }
   0x4   :  { %15 = vsyncpa [#allocation9], 0 }
   0x5   :  { %17 = vsyncpa [#allocation9 + $0x1], 0  ;;  %s1269_s15 = smov 0   ;;  %s1271_s16 = smov 0  }
   0x6   :  { %s1273_s17 = smov 0   ;;  %s1275_s18 = smov 0  }
   0x7 LB: > { %s1290_s19 = sadd.s32 4294967295, %s1228_s18   ;;  %s819_s20 = sadd.s32 4294967294, %s1228_s18   ;;  %s1228_s18 = sphi %s1275_s18, %s1521_s18   ;;  %s1224_s17 = sphi %s1273_s17, %s1520_s17   ;;  %s1220_s16 = sphi %s1271_s16, %s1519_s16   ;;  %s1216_s15 = sphi %s1269_s15, %s1518_s15  }
   0x8   : > { %s1294_s21 = sadd.s32 1, %s1228_s18   ;;  %s98_s22 = sadd.s32 1, %s1224_s17 }
   0x9   : > { %s95_s23 = ssub.s32 %s1228_s18, %s1294_s21  ;;  %p108_p0 = scmp.ne.s32.totalorder %s1224_s17, %s1220_s16 }
   0xa   : > { %p96_p1 = scmp.eq.s32.totalorder %s95_s23, 0  ;;  %p109_p2 = scmp.eq.s32.totalorder %s1290_s19, 1 }
   0xb   : > { %p114_p3 = scmp.ne.s32.totalorder %s1220_s16, %s1216_s15  ;;  %p115_p4 = scmp.eq.s32.totalorder %s819_s20, 1 }
   0xc   : > { %s1305_s24 = scalar_select %p96_p1, %s1224_s17, %s98_s22  }
   0xd   : > { %p1307_p5 = por %p109_p2, %p108_p0  ;;  %p1311_p6 = por %p115_p4, %p114_p3 }
   0xe   : > { %p820_p7 = scmp.ge.s32.totalorder %s1228_s18, 1  ;;  %p148_p8 = scmp.lt.s32.totalorder %s1228_s18, 3 }
   0xf   : > { %s1507_s25 = scalar_select %p1307_p5, 1, 0 }
  0x10   : > { %s1508_s26 = scalar_select %p1311_p6, 1, 0 }
  0x11   : > { %p1504_p9 = scmp.eq.s32.totalorder %s1290_s19, 0  ;;  %p1318_p10 = pnand %p820_p7, %p148_p8 }
  0x12   : > { %s1230_s28 = smov [#allocation2]   ;;  %s1231_s5 = smov [#allocation5]  }
  0x13   : > { %s1509_s27 = scalar_select %p1318_p10, 1, 0 }
  0x14   : > { %s160_s29 = sshll.u32 %s1230_s28, 4  ;;  %p1000_p11 = pneg %p1318_p10  ;;  %s161_s29 = int_to_ptr.vmem [resolvable:$true] %s160_s29 }
  0x15   : > { %s173_s6 = sshll.u32 %s1231_s5, 4  ;;  %s1070_s9 = scalar_lea.hbm %s1500_s1, 4096  ;;  %s1330_s6 = int_to_ptr.vmem [resolvable:$true] %s173_s6 }
  0x16   : > { %p1326_p12 = pnand %p1504_p9, %p1000_p11  ;;  %p1071_p13 = scmp.ne.s32.totalorder %s1500_s1, %s1070_s9 }
  0x17   : > { %p1077_p3 = scmp.lt.u32.totalorder %s1070_s9, %s1500_s1 }
  0x18   : > { %p1072_p0 = pneg %p1326_p12 }
  0x1a   : > { %p1073_p1 = pnand %p1072_p0, %p1071_p13 }
  0x1c   : > { %p1074_p2 = pneg %p1073_p1 }
  0x1e   : > { %p1079_p4 = pnand %p1077_p3, %p1074_p2 }
  0x20   : > { %1082 = shalt.err (!%p1079_p4)
}
  0x21   : > { %s1083_s14 = scalar_lea.vmem %s161_s29, 4096  ;;  %p1091_p9 = scmp.lt.s32.totalorder %s161_s29, %s161_s29 }
  0x22   : > { %p1084_p7 = scmp.ne.s32.totalorder %s161_s29, %s1083_s14  ;;  %p1092_p6 = scmp.lt.s32.totalorder %s1083_s14, %s1083_s14 }
  0x24   : > { %p1086_p8 = pnand %p1084_p7, %p1072_p0  ;;  %p1093_p5 = por %p1092_p6, %p1091_p9 }
  0x26   : > { %p1087_p11 = pneg %p1086_p8 }
  0x28   : > { %p1094_p10 = pnand %p1093_p5, %p1087_p11 }
  0x2a   : > { %1097 = shalt.err (!%p1094_p10)
}
  0x2b   : > { %s1232_s20 = smov 128   ;;  %s1233_s22 = smov 8  }
  0x2c   : > { %1003 = dma.hbm_to_vmem [thread:$0]  (!%p1326_p12), %s1500_s1, 4096, %s161_s29, [#allocation3], %s1232_s20, %s1232_s20, %s1233_s22  }
  0x2d   : > { %s1098_s8 = scalar_lea.hbm %s1501_s2, 4096 }
  0x2e   : > { %p1099_p13 = scmp.ne.s32.totalorder %s1501_s2, %s1098_s8  ;;  %p1105_p9 = scmp.lt.u32.totalorder %s1098_s8, %s1501_s2 }
  0x30   : > { %p1101_p5 = pnand %p1099_p13, %p1072_p0 }
  0x32   : > { %p1102_p6 = pneg %p1101_p5 }
  0x34   : > { %p1107_p10 = pnand %p1105_p9, %p1102_p6 }
  0x36   : > { %1110 = shalt.err (!%p1107_p10)
}
  0x37   : > { %s1111_s29 = scalar_lea.vmem %s1330_s6, 4096  ;;  %p1119_p4 = scmp.lt.s32.totalorder %s1330_s6, %s1330_s6 }
  0x38   : > { %p1112_p1 = scmp.ne.s32.totalorder %s1330_s6, %s1111_s29  ;;  %p1120_p7 = scmp.lt.s32.totalorder %s1111_s29, %s1111_s29 }
  0x3a   : > { %p1114_p2 = pnand %p1112_p1, %p1072_p0  ;;  %p1121_p8 = por %p1120_p7, %p1119_p4 }
  0x3c   : > { %p1115_p3 = pneg %p1114_p2 }
  0x3e   : > { %p1122_p11 = pnand %p1121_p8, %p1115_p3 }
  0x40   : > { %1125 = shalt.err (!%p1122_p11)
}
  0x41   : > { %1006 = dma.hbm_to_vmem [thread:$0]  (!%p1326_p12), %s1501_s2, 4096, %s1330_s6, [#allocation6], %s1232_s20, %s1232_s20, %s1233_s22  }
  0x42   : > { %p1511_p13 = scmp.ne.s32.totalorder %s1509_s27, 0 }
  0x43   : > { %p1512_p5 = scmp.eq.s32.totalorder (!%p1511_p13), %s1290_s19, 0 }
  0x44   : > { %196 = sbr.rel (%p1511_p13) target bundleno = 579 (0x243), region = 32 }
  0x4b   : > { %1199 = dma.done.wait (%p1512_p5), [#allocation3], 4096   ;;  %p1513_p0 = pmov %p1512_p5 }
  0x4d   : > { %1201 = vsyncadd (%p1513_p0), [#allocation3], 4294963200  ;;  %p1514_p6 = pmov %p1513_p0 }
  0x4e   : > { %p1515_p9 = pmov %p1513_p0 }
  0x4f   : > { %1203 = dma.done.wait (%p1514_p6), [#allocation6], 4096  }
  0x50   : > { %1205 = vsyncadd (%p1515_p9), [#allocation6], 4294963200  ;;  %p230_p10 = scmp.lt.s32.totalorder %s1290_s19, 1  ;;  %v1234_v0 = vmov 0   ;;  %v263_v2 = vld [vmem:[#allocation2 + $0x80] sm:$0xff]  ;;  %v264_v3 = vld [vmem:[#allocation2 + $0x88] sm:$0xff] }
  0x51   : > { %1063 = vset.pattern.permute.xlu0 %v1234_v0  ;;  %v920_v4 = vpack.c.bf16 %v264_v3, %v263_v2  ;;  %v365_v5 = vld [vmem:[#allocation5 + $0x80] sm:$0xff]  ;;  %v366_v6 = vld [vmem:[#allocation5 + $0x88] sm:$0xff]  ;;  %v265_v14 = vld [vmem:[#allocation2 + $0x90] sm:$0xff]  ;;  %s1420_s23 = sand.u32 1, %s1220_s16   ;;  %s846_s5 = sshll.u32 %s1290_s19, 7 }
  0x52   : > { %s231_s30 = scalar_select %p230_p10, %s1290_s19, 1  ;;  %v247_v7 = vld [vmem:[#allocation2] sm:$0xff]  ;;  %v952_v8 = vpack.c.bf16 %v366_v6, %v365_v5  ;;  %v248_v9 = vld [vmem:[#allocation2 + $0x8] sm:$0xff]  ;;  %v266_v15 = vld [vmem:[#allocation2 + $0x98] sm:$0xff] }
  0x53   : > { %v349_v10 = vld [vmem:[#allocation5] sm:$0xff]  ;;  %v350_v11 = vld [vmem:[#allocation5 + $0x8] sm:$0xff]  ;;  %921 = vmatprep.subr.bf16.mxu0 %v920_v4  ;;  %v922_v12 = vpack.c.bf16 %v248_v9, %v247_v7  ;;  %v367_v16 = vld [vmem:[#allocation5 + $0x90] sm:$0xff]  ;;  %v924_v17 = vpack.c.bf16 %v266_v15, %v265_v14  ;;  %s827_s28 = sshll.u32 %s1420_s23, 3  ;;  %s1427_s29 = scalar_lea.hbm %s1502_s3, %s846_s5 }
  0x54   : > { %s829_s27 = sshll.u32 %s231_s30, 3  ;;  %v954_v13 = vpack.c.bf16 %v350_v11, %v349_v10  ;;  %953 = vmatprep.subr.bf16.mxu1 %v952_v8  ;;  %v368_v18 = vld [vmem:[#allocation5 + $0x98] sm:$0xff]  ;;  %v249_v19 = vld [vmem:[#allocation2 + $0x10] sm:$0xff]  ;;  %v267_v25 = vld [vmem:[#allocation2 + $0xa0] sm:$0xff]  ;;  %s222_s7 = scalar_lea.vmem [#allocation7], %s827_s28 }
  0x55   : > { %s233_s22 = scalar_lea.vmem %s1499_s0, %s829_s27  ;;  %v250_v20 = vld [vmem:[#allocation2 + $0x18] sm:$0xff]  ;;  %923 = vmatpush3.bf16.msra.mxu0 %v922_v12  ;;  %v956_v21 = vpack.c.bf16 %v368_v18, %v367_v16  ;;  %v351_v23 = vld [vmem:[#allocation5 + $0x10] sm:$0xff]  ;;  %v268_v27 = vld [vmem:[#allocation2 + $0xa8] sm:$0xff]  ;;  %s693_s8 = sshll.u32 %s222_s7, 4  ;;  %s1429_s8 = int_to_ptr.vmem [resolvable:$true] %s693_s8 }
  0x56   : > { %v234_v1 = vld [vmem:[%s233_s22] sm:$0xff]  ;;  %955 = vmatpush3.bf16.msra.mxu1 %v954_v13  ;;  %v926_v22 = vpack.c.bf16 %v250_v20, %v249_v19  ;;  %v352_v24 = vld [vmem:[#allocation5 + $0x18] sm:$0xff]  ;;  %925 = vmatprep.subr.bf16.mxu0 %v924_v17  ;;  %v369_v28 = vld [vmem:[#allocation5 + $0xa0] sm:$0xff]  ;;  %v928_v30 = vpack.c.bf16 %v268_v27, %v267_v25  ;;  %s229_s9 = scalar_lea.vmem [#allocation8], %s827_s28  ;;  %s1434_s19 = scalar_lea.hbm %s1503_s4, %s846_s5 }
  0x57   : > { %239 = vperm.xlu0 %1063, %v234_v1   ;;  %v958_v26 = vpack.c.bf16 %v352_v24, %v351_v23  ;;  %v370_v29 = vld [vmem:[#allocation5 + $0xa8] sm:$0xff]  ;;  %957 = vmatprep.subr.bf16.mxu1 %v956_v21  ;;  %v251_v32 = vld [vmem:[#allocation2 + $0x20] sm:$0xff]  ;;  %v269_v36 = vld [vmem:[#allocation2 + $0xb0] sm:$0xff]  ;;  %s706_s10 = sshll.u32 %s229_s9, 4  ;;  %s675_s30 = scalar_lea.sflag [#allocation4], %s1420_s23  ;;  %s1436_s10 = int_to_ptr.vmem [resolvable:$true] %s706_s10 }
  0x58   : > { %v960_v31 = vpack.c.bf16 %v370_v29, %v369_v28  ;;  %v252_v33 = vld [vmem:[#allocation2 + $0x28] sm:$0xff]  ;;  %v353_v34 = vld [vmem:[#allocation5 + $0x20] sm:$0xff]  ;;  %v270_v37 = vld [vmem:[#allocation2 + $0xb8] sm:$0xff]  ;;  %s1126_s27 = scalar_lea.vmem %s1429_s8, 128  ;;  %p1516_p1 = scmp.ne.s32.totalorder %s1507_s25, 0 }
  0x59   : > { %v354_v35 = vld [vmem:[#allocation5 + $0x28] sm:$0xff]  ;;  %927 = vmatpush3.bf16.msra.mxu0 %v926_v22  ;;  %v930_v38 = vpack.c.bf16 %v252_v33, %v251_v32  ;;  %v371_v40 = vld [vmem:[#allocation5 + $0xb0] sm:$0xff]  ;;  %v372_v41 = vld [vmem:[#allocation5 + $0xb8] sm:$0xff]  ;;  %v932_v43 = vpack.c.bf16 %v270_v37, %v269_v36  ;;  %p1127_p12 = scmp.ne.s32.totalorder %s1429_s8, %s1126_s27  ;;  %s1242_s6 = smov [#allocation7]  }
  0x5a   : > { %959 = vmatpush3.bf16.msra.mxu1 %v958_v26  ;;  %v962_v39 = vpack.c.bf16 %v354_v35, %v353_v34  ;;  %v253_v42 = vld [vmem:[#allocation2 + $0x30] sm:$0xff]  ;;  %929 = vmatprep.subr.bf16.mxu0 %v928_v30  ;;  %v964_v44 = vpack.c.bf16 %v372_v41, %v371_v40  ;;  %v254_v45 = vld [vmem:[#allocation2 + $0x38] sm:$0xff]  ;;  %v271_v48 = vld [vmem:[#allocation2 + $0xc0] sm:$0xff]  ;;  %v235_v34 = vlaneseq  ;;  %s1130_s20 = sshll.u32 %s1242_s6, 4  ;;  %s1131_s20 = int_to_ptr.vmem [resolvable:$false] %s1130_s20 }
  0x5b   : > { %961 = vmatprep.subr.bf16.mxu1 %v960_v31  ;;  %v355_v46 = vld [vmem:[#allocation5 + $0x30] sm:$0xff]  ;;  %v356_v47 = vld [vmem:[#allocation5 + $0x38] sm:$0xff]  ;;  %v272_v49 = vld [vmem:[#allocation2 + $0xc8] sm:$0xff]  ;;  %v934_v52 = vpack.c.bf16 %v254_v45, %v253_v42  ;;  %p1128_p2 = pnand %p1127_p12, %p1516_p1  ;;  %s1132_s22 = scalar_lea.vmem %s1131_s20, 256 }
  0x5c   : > { %v373_v50 = vld [vmem:[#allocation5 + $0xc0] sm:$0xff]  ;;  %v374_v51 = vld [vmem:[#allocation5 + $0xc8] sm:$0xff]  ;;  %v966_v53 = vpack.c.bf16 %v356_v47, %v355_v46  ;;  %v936_v56 = vpack.c.bf16 %v272_v49, %v271_v48  ;;  %v273_v60 = vld [vmem:[#allocation2 + $0xd0] sm:$0xff]  ;;  %v236_v35 = vand.u32 127, %v235_v34  ;;  %p1133_p4 = scmp.lt.s32.totalorder %s1429_s8, %s1131_s20  ;;  %p1134_p7 = scmp.lt.s32.totalorder %s1132_s22, %s1126_s27 }
  0x5d   : > { %931 = vmatpush3.bf16.msra.mxu0 %v930_v38  ;;  %v255_v54 = vld [vmem:[#allocation2 + $0x40] sm:$0xff]  ;;  %v256_v55 = vld [vmem:[#allocation2 + $0x48] sm:$0xff]  ;;  %v968_v57 = vpack.c.bf16 %v374_v51, %v373_v50  ;;  %v274_v61 = vld [vmem:[#allocation2 + $0xd8] sm:$0xff]  ;;  %v1235_v38 = vmov 1.0   ;;  %p1129_p3 = pneg %p1128_p2 }
  0x5e   : > { %963 = vmatpush3.bf16.msra.mxu1 %v962_v39  ;;  %933 = vmatprep.subr.bf16.mxu0 %v932_v43  ;;  %v357_v58 = vld [vmem:[#allocation5 + $0x40] sm:$0xff]  ;;  %v358_v59 = vld [vmem:[#allocation5 + $0x48] sm:$0xff]  ;;  %v375_v62 = vld [vmem:[#allocation5 + $0xd0] sm:$0xff]  ;;  %v938_v0 = vpack.c.bf16 %v256_v55, %v255_v54  ;;  %v940_v4 = vpack.c.bf16 %v274_v61, %v273_v60  ;;  %v237_v36 = vadd.s32 128, %v236_v35  ;;  %v1236_v61 = vmov 2102212464   ;;  %p1135_p8 = por %p1134_p7, %p1133_p4 }
  0x5f   : > { %965 = vmatprep.subr.bf16.mxu1 %v964_v44  ;;  %v376_v63 = vld [vmem:[#allocation5 + $0xd8] sm:$0xff]  ;;  %v970_v1 = vpack.c.bf16 %v358_v59, %v357_v58  ;;  %v257_v2 = vld [vmem:[#allocation2 + $0x50] sm:$0xff]  ;;  %v275_v8 = vld [vmem:[#allocation2 + $0xe0] sm:$0xff] }
  0x60   : > { %v258_v3 = vld [vmem:[#allocation2 + $0x58] sm:$0xff]  ;;  %v972_v5 = vpack.c.bf16 %v376_v63, %v375_v62  ;;  %v359_v6 = vld [vmem:[#allocation5 + $0x50] sm:$0xff]  ;;  %v276_v9 = vld [vmem:[#allocation2 + $0xe8] sm:$0xff]  ;;  %v1237_v63 = vmov 920167782   ;;  %p1136_p11 = pnand %p1135_p8, %p1129_p3 }
  0x61   : > { %935 = vmatpush3.bf16.msra.mxu0 %v934_v52  ;;  %v360_v7 = vld [vmem:[#allocation5 + $0x58] sm:$0xff]  ;;  %v377_v10 = vld [vmem:[#allocation5 + $0xe0] sm:$0xff]  ;;  %v378_v11 = vld [vmem:[#allocation5 + $0xe8] sm:$0xff]  ;;  %v942_v12 = vpack.c.bf16 %v258_v3, %v257_v2  ;;  %v944_v16 = vpack.c.bf16 %v276_v9, %v275_v8  ;;  %v1238_v3 = vmov 1326507024  }
  0x62   : > { %967 = vmatpush3.bf16.msra.mxu1 %v966_v53  ;;  %937 = vmatprep.subr.bf16.mxu0 %v936_v56  ;;  %v974_v13 = vpack.c.bf16 %v360_v7, %v359_v6  ;;  %v259_v14 = vld [vmem:[#allocation2 + $0x60] sm:$0xff]  ;;  %v260_v15 = vld [vmem:[#allocation2 + $0x68] sm:$0xff]  ;;  %v976_v17 = vpack.c.bf16 %v378_v11, %v377_v10  ;;  %v277_v20 = vld [vmem:[#allocation2 + $0xf0] sm:$0xff]  ;;  %v1240_v7 = vmov 2475754826  }
  0x63   : > { %969 = vmatprep.subr.bf16.mxu1 %v968_v57  ;;  %v361_v18 = vld [vmem:[#allocation5 + $0x60] sm:$0xff]  ;;  %v362_v19 = vld [vmem:[#allocation5 + $0x68] sm:$0xff]  ;;  %v278_v21 = vld [vmem:[#allocation2 + $0xf8] sm:$0xff]  ;;  %v946_v24 = vpack.c.bf16 %v260_v15, %v259_v14  ;;  %v1241_v10 = vmov 2131351028  }
  0x64   : > { %v379_v22 = vld [vmem:[#allocation5 + $0xf0] sm:$0xff]  ;;  %v380_v23 = vld [vmem:[#allocation5 + $0xf8] sm:$0xff]  ;;  %v978_v25 = vpack.c.bf16 %v362_v19, %v361_v18  ;;  %v948_v27 = vpack.c.bf16 %v278_v21, %v277_v20 }
  0x65   : > { %939 = vmatpush3.bf16.msra.mxu0 %v938_v0  ;;  %v261_v26 = vld [vmem:[#allocation2 + $0x70] sm:$0xff]  ;;  %v980_v28 = vpack.c.bf16 %v380_v23, %v379_v22  ;;  %v262_v29 = vld [vmem:[#allocation2 + $0x78] sm:$0xff] }
  0x66   : > { %971 = vmatpush3.bf16.msra.mxu1 %v970_v1  ;;  %941 = vmatprep.subr.bf16.mxu0 %v940_v4  ;;  %v363_v30 = vld [vmem:[#allocation5 + $0x70] sm:$0xff]  ;;  %v364_v31 = vld [vmem:[#allocation5 + $0x78] sm:$0xff]  ;;  %v950_v32 = vpack.c.bf16 %v262_v29, %v261_v26 }
  0x67   : > { %973 = vmatprep.subr.bf16.mxu1 %v972_v5  ;;  %v982_v33 = vpack.c.bf16 %v364_v31, %v363_v30  ;;  %v1239_v5 = vmov 683565275  }
  0x69   : > { %943 = vmatpush3.bf16.msra.mxu0 %v942_v12 }
  0x6a   : > { %975 = vmatpush3.bf16.msra.mxu1 %v974_v13  ;;  %945 = vmatprep.subr.bf16.mxu0 %v944_v16 }
  0x6b   : > { %977 = vmatprep.subr.bf16.mxu1 %v976_v17 }
  0x6d   : > { %947 = vmatpush3.bf16.msra.mxu0 %v946_v24 }
  0x6e   : > { %979 = vmatpush3.bf16.msra.mxu1 %v978_v25  ;;  %949 = vmatprep.subr.bf16.mxu0 %v948_v27 }
  0x6f   : > { %981 = vmatprep.subr.bf16.mxu1 %v980_v28 }
  0x71   : > { %951 = vmatpush3.bf16.msra.mxu0 %v950_v32 }
  0x72   : > { %983 = vmatpush3.bf16.msra.mxu1 %v982_v33 }
  0xd6   : > { %v240_v37 = vpop.permute.xlu0 %239 }
  0xd7   : > { %vm241_vm0 = vcmp.eq.s32.totalorder %v236_v35, %v240_v37  ;;  %vm242_vm1 = vcmp.eq.s32.totalorder %v237_v36, %v240_v37 }
  0xd8   : > { %832 = vmatprep.mubr.msk.f32.mxu0 %vm242_vm1, %v1235_v38  ;;  %834 = vmatprep.mubr.msk.f32.mxu1 %vm242_vm1, %v1235_v38 }
  0xd9   : > { %833 = vmatmul.mubr.msk.f32.vlgmr.msra.gmra.mrb[0].mxu0 %vm241_vm0, %v1235_v38  ;;  %835 = vmatmul.mubr.msk.f32.vlgmr.msra.gmra.mrb[0].mxu1 %vm241_vm0, %v1235_v38 }
 0x1ac   : > { %v882_v39 = vpop.f32.mrb[0].mxu0  ;;  %v917_v40 = vpop.f32.mrb[0].mxu1 }
 0x1ad   : > { %v883_v41 = vpop.f32.mrb[1].mxu0  ;;  %v918_v42 = vpop.f32.mrb[1].mxu1 }
 0x1ae   : > { %v884_v43 = vadd.f32 %v883_v41, %v882_v39  ;;  %v1394_v44 = vadd.f32 %v918_v42, %v917_v40 }
 0x1b0   : > { %v451_v45 = vmul.f32 162.8155, %v884_v43 }
 0x1b2   : > { %v452_v46 = vfloor.f32 %v451_v45 }
 0x1b4   : > { %v453_v47 = vmax.f32 %v452_v46, 0.0 }
 0x1b6   : > { %v454_v48 = vmin.f32 %v453_v47, 1023.0 }
 0x1b8   : > { %v1396_v49 = vmul.f32 0.006141921, %v454_v48 }
 0x1ba   : > { %v459_v50 = vand.u32 2139095040, %v1396_v49  ;;  %v456_v51 = vand.u32 2147483647, %v1396_v49  ;;  %vm458_vm9 = vcmp.lt.s32.totalorder %v1396_v49, 0  ;;  %vm548_vm1 = vweird.f32 %v1396_v49 }
 0x1bc   : > { %v460_v52 = vshrl.u32 %v459_v50, 23  ;;  %v463_v54 = vand.u32 8388607, %v456_v51  ;;  %vm457_vm10 = vcmp.le.f32.partialorder %v456_v51, 0.7853982 }
 0x1be   : > { %v836_v53 = vadd.s32 4294967169, %v460_v52  ;;  %v464_v57 = vor.u32 8388608, %v463_v54 }
 0x1c0   : > { %v466_v55 = vadd.s32 1, %v836_v53  ;;  %v504_v1 = vshll.u32 %v464_v57, 8 }
 0x1c2   : > { %vm467_vm2 = vcmp.gt.s32.totalorder %v466_v55, 0 }
 0x1c3   : > { %v468_v56 = vsel %vm467_vm2, %v466_v55, 0 }
 0x1c4   : > { %v470_v58 = vand.u32 31, %v468_v56  ;;  %v469_v59 = vshrl.u32 %v468_v56, 5 }
 0x1c6   : > { %v471_v60 = vsub.s32 32, %v470_v58  ;;  %v482_v62 = vshll.u32 %v1236_v61, %v470_v58  ;;  %v485_v0 = vshll.u32 %v1237_v63, %v470_v58  ;;  %v473_v6 = vshll.u32 %v1239_v5, %v470_v58 }
 0x1c7   : > { %v476_v9 = vshll.u32 %v1240_v7, %v470_v58  ;;  %v479_v12 = vshll.u32 %v1241_v10, %v470_v58  ;;  %vm491_vm3 = vcmp.lt.s32.totalorder %v469_v59, 4  ;;  %vm488_vm4 = vcmp.lt.s32.totalorder %v469_v59, 1 }
 0x1c8   : > { %v483_v2 = vshrl.u32 %v1237_v63, %v471_v60  ;;  %v486_v4 = vshrl.u32 %v1238_v3, %v471_v60  ;;  %v474_v8 = vshrl.u32 %v1240_v7, %v471_v60  ;;  %v477_v11 = vshrl.u32 %v1241_v10, %v471_v60 }
 0x1c9   : > { %v480_v13 = vshrl.u32 %v1236_v61, %v471_v60  ;;  %v472_v17 = vshrl.u32 %v1239_v5, %v471_v60  ;;  %vm489_vm5 = vcmp.lt.s32.totalorder %v469_v59, 2  ;;  %vm490_vm6 = vcmp.lt.s32.totalorder %v469_v59, 3 }
 0x1ca   : > { %v484_v14 = vor.u32 %v483_v2, %v482_v62  ;;  %v487_v15 = vor.u32 %v486_v4, %v485_v0  ;;  %v475_v16 = vor.u32 %v474_v8, %v473_v6  ;;  %v478_v18 = vor.u32 %v477_v11, %v476_v9 }
 0x1cb   : > { %v481_v19 = vor.u32 %v480_v13, %v479_v12 }
 0x1cc   : > { %v497_v20 = vsel %vm491_vm3, %v484_v14, 920167782  ;;  %v501_v21 = vsel %vm491_vm3, %v487_v15, 1326507024  ;;  %v496_v23 = vsel %vm488_vm4, %v475_v16, %v478_v18  ;;  %v492_v26 = vsel %vm488_vm4, %v472_v17, %v475_v16 }
 0x1cd   : > { %v493_v22 = vsel %vm491_vm3, %v481_v19, 2102212464  ;;  %v498_v24 = vsel %vm490_vm6, %v481_v19, %v497_v20  ;;  %v500_v25 = vsel %vm488_vm4, %v478_v18, %v481_v19  ;;  %v502_v29 = vsel %vm490_vm6, %v484_v14, %v501_v21 }
 0x1ce   : > { %v494_v27 = vsel %vm490_vm6, %v478_v18, %v493_v22  ;;  %v499_v28 = vsel %vm489_vm5, %v496_v23, %v498_v24  ;;  %v503_v30 = vsel %vm489_vm5, %v500_v25, %v502_v29 }
 0x1cf   : > { %v1402_v31 = vmul.u32.u64.low %v504_v1, %v499_v28  ;;  %v1403_v32 = vmul.u32.u64.high %v504_v1, %v499_v28, %v1402_v31  ;;  %v1405_v33 = vmul.u32.u64.low %v504_v1, %v503_v30  ;;  %v1406_v34 = vmul.u32.u64.high %v504_v1, %v503_v30, %v1405_v33 }
 0x1d0   : > { %v495_v35 = vsel %vm489_vm5, %v492_v26, %v494_v27 }
 0x1d1   : > { %v514_v36 = vadd.s32 1, %v1403_v32  ;;  %v511_v37 = vmul.u32 %v504_v1, %v495_v35  ;;  %vm513_vm7 = vc.u32 %v1406_v34, %v1402_v31  ;;  %v512_v52 = vadd.s32 %v1402_v31, %v1406_v34 }
 0x1d3   : > { %v515_v38 = vsel %vm513_vm7, %v514_v36, %v1403_v32 }
 0x1d4   : > { %v516_v39 = vadd.s32 %v515_v38, %v511_v37 }
 0x1d6   : > { %v517_v40 = vadd.s32 536870912, %v516_v39 }
 0x1d8   : > { %v518_v41 = vshrl.u32 %v517_v40, 30 }
 0x1da   : > { %v519_v42 = vshll.u32 %v518_v41, 30  ;;  %v542_v0 = vsub.s32 4, %v518_v41 }
 0x1dc   : > { %v520_v43 = vsub.s32 %v516_v39, %v519_v42  ;;  %v543_v3 = vsel %vm458_vm9, %v542_v0, %v518_v41 }
 0x1dd   : > { %v545_v5 = vsel %vm457_vm10, 0, %v543_v3 }
 0x1de   : > { %v522_v45 = vsub.s32 0, %v520_v43  ;;  %v652_v6 = vadd.s32 3, %v545_v5  ;;  %v549_v7 = vand.u32 3, %v545_v5 }
 0x1e0   : > { %v837_v46 = vmin.u32 %v522_v45, %v520_v43  ;;  %v653_v8 = vand.u32 3, %v652_v6  ;;  %vm554_vm11 = vcmp.eq.s32.totalorder %v549_v7, 2  ;;  %vm551_vm13 = vcmp.eq.s32.totalorder %v549_v7, 0 }
 0x1e1   : > { %vm550_vm15 = vcmp.lt.s32.totalorder %v549_v7, 2 }
 0x1e2   : > { %v524_v47 = vclz %v837_v46  ;;  %vm658_vm12 = vcmp.eq.s32.totalorder %v653_v8, 2  ;;  %vm655_vm14 = vcmp.eq.s32.totalorder %v653_v8, 0  ;;  %vm654_vm0 = vcmp.lt.s32.totalorder %v653_v8, 2 }
 0x1e4   : > { %v838_v48 = vadd.s32 4294967294, %v524_v47 }
 0x1e6   : > { %vm839_vm8 = vcmp.lt.s32.totalorder %v838_v48, 0 }
 0x1e7   : > { %v527_v50 = vsel %vm839_vm8, 0, %v838_v48 }
 0x1e8   : > { %v528_v53 = vsub.s32 32, %v527_v50  ;;  %v532_v54 = vsub.s32 4294967266, %v527_v50  ;;  %v529_v55 = vshll.u32 %v520_v43, %v527_v50 }
 0x1ea   : > { %v530_v56 = vshrl.u32 %v512_v52, %v528_v53  ;;  %v533_v57 = vadd.s32 127, %v532_v54 }
 0x1ec   : > { %v531_v58 = vor.u32 %v530_v56, %v529_v55  ;;  %v534_v59 = vshll.u32 %v533_v57, 23 }
 0x1ee   : > { %v535_v60 = vor.u32 4788187, %v534_v59  ;;  %v538_v62 = vcvt.s32.f32 %v531_v58 }
 0x1f0   : > { %v536_v61 = vand.u32 2147483647, %v535_v60 }
 0x1f2   : > { %v539_v63 = vmul.f32 %v538_v62, %v536_v61 }
 0x1f4   : > { %v540_v1 = vxor.u32 2147483648, %v539_v63 }
 0x1f6   : > { %v541_v2 = vsel %vm458_vm9, %v540_v1, %v539_v63 }
 0x1f7   : > { %v544_v4 = vsel %vm457_vm10, %v1396_v49, %v541_v2 }
 0x1f8   : > { %1064 = vcosq.f32 %v544_v4 }
 0x1f9   : > { %1066 = vsinq.f32 %v544_v4 }
 0x202   : > { %v1065_v9 = vpop.eup %1064 }
 0x203   : > { %v1067_v10 = vpop.eup %1066  ;;  %v555_v11 = vxor.u32 2147483648, %v1065_v9 }
 0x204   : > { %v552_v12 = vxor.u32 2147483648, %v1067_v10 }
 0x205   : > { %v556_v13 = vsel %vm554_vm11, %v555_v11, %v1067_v10  ;;  %v660_v51 = vsel %vm658_vm12, %v555_v11, %v1067_v10 }
 0x206   : > { %v553_v14 = vsel %vm551_vm13, %v1065_v9, %v552_v12  ;;  %v657_v15 = vsel %vm655_vm14, %v1065_v9, %v552_v12 }
 0x207   : > { %v557_v16 = vsel %vm550_vm15, %v553_v14, %v556_v13  ;;  %v661_v17 = vsel %vm654_vm0, %v657_v15, %v660_v51 }
 0x208   : > { %v558_v18 = vsel %vm548_vm1, nan, %v557_v16  ;;  %v662_v19 = vsel %vm548_vm1, nan, %v661_v17 }
 0x209   : > { %v663_v20 = vmul.f32 %v1394_v44, %v558_v18  ;;  %v664_v21 = vmul.f32 %v1394_v44, %v662_v19 }
 0x20b   : > { %v665_v22 = vmul.f32 %v663_v20, %v663_v20  ;;  %v666_v23 = vmul.f32 %v664_v21, %v664_v21 }
 0x20d   : > { %v667_v24 = vadd.f32 %v666_v23, %v665_v22 }
 0x20f   : > { %v668_v25 = vadd.f32 1e-08, %v667_v24 }
 0x211   : > { %1068 = vrsqrt.f32 %v668_v25 }
 0x21b   : > { %v1069_v49 = vpop.eup %1068 }
 0x21c   : > { %v670_v44 = vmul.f32 %v1069_v49, %v663_v20  ;;  %v672_v26 = vmul.f32 %v1069_v49, %v664_v21 }
 0x21e   : > { %671 = vst [vmem:[%s222_s7] sm:$0xff] %v670_v44  ;;  %673 = vst [vmem:[%s229_s9] sm:$0xff] %v672_v26 }
 0x21f   : > { %1139 = shalt.err (!%p1136_p11)
}
 0x220   : > { %s1140_s28 = scalar_lea.hbm %s1427_s29, 128  ;;  %s1144_s9 = scalar_lea.hbm %s1502_s3, 256 }
 0x221   : > { %p1141_p13 = scmp.ne.s32.totalorder %s1427_s29, %s1140_s28  ;;  %p1145_p6 = scmp.lt.u32.totalorder %s1427_s29, %s1502_s3 }
 0x222   : > { %p1146_p9 = scmp.lt.u32.totalorder %s1144_s9, %s1140_s28  ;;  %p1148_p12 = scmp.lt.u32.totalorder %s1140_s28, %s1427_s29 }
 0x223   : > { %p1142_p5 = pnand %p1141_p13, %p1516_p1 }
 0x224   : > { %p1147_p10 = por %p1146_p9, %p1145_p6 }
 0x225   : > { %p1143_p0 = pneg %p1142_p5 }
 0x226   : > { %p1149_p2 = por %p1148_p12, %p1147_p10 }
 0x228   : > { %p1150_p3 = pnand %p1149_p2, %p1143_p0 }
 0x22a   : > { %1153 = shalt.err (!%p1150_p3)
}
 0x22b   : > { %996 = dma.vmem_to_hbm [thread:$0]  (%p1516_p1), %s1429_s8, 128, %s1427_s29, %s675_s30  }
 0x22c   : > { %s680_s13 = scalar_lea.sflag [#allocation9], %s1420_s23  ;;  %s1154_s14 = scalar_lea.vmem %s1436_s10, 128 }
 0x22d   : > { %p1155_p4 = scmp.ne.s32.totalorder %s1436_s10, %s1154_s14  ;;  %s1243_s27 = smov [#allocation8]  }
 0x22e   : > { %s1158_s6 = sshll.u32 %s1243_s27, 4  ;;  %s1159_s6 = int_to_ptr.vmem [resolvable:$false] %s1158_s6 }
 0x22f   : > { %p1156_p7 = pnand %p1155_p4, %p1516_p1  ;;  %s1160_s20 = scalar_lea.vmem %s1159_s6, 256 }
 0x230   : > { %p1161_p11 = scmp.lt.s32.totalorder %s1436_s10, %s1159_s6  ;;  %p1162_p13 = scmp.lt.s32.totalorder %s1160_s20, %s1154_s14 }
 0x231   : > { %p1157_p8 = pneg %p1156_p7 }
 0x232   : > { %p1163_p5 = por %p1162_p13, %p1161_p11 }
 0x234   : > { %p1164_p0 = pnand %p1163_p5, %p1157_p8 }
 0x236   : > { %1167 = shalt.err (!%p1164_p0)
}
 0x237   : > { %s1168_s23 = scalar_lea.hbm %s1434_s19, 128  ;;  %s1172_s30 = scalar_lea.hbm %s1503_s4, 256 }
 0x238   : > { %p1169_p6 = scmp.ne.s32.totalorder %s1434_s19, %s1168_s23  ;;  %p1173_p12 = scmp.lt.u32.totalorder %s1434_s19, %s1503_s4 }
 0x239   : > { %p1174_p2 = scmp.lt.u32.totalorder %s1172_s30, %s1168_s23  ;;  %p1176_p4 = scmp.lt.u32.totalorder %s1168_s23, %s1434_s19 }
 0x23a   : > { %p1170_p9 = pnand %p1169_p6, %p1516_p1 }
 0x23b   : > { %p1175_p3 = por %p1174_p2, %p1173_p12 }
 0x23c   : > { %p1171_p10 = pneg %p1170_p9 }
 0x23d   : > { %p1177_p7 = por %p1176_p4, %p1175_p3 }
 0x23f   : > { %p1178_p8 = pnand %p1177_p7, %p1171_p10 }
 0x241   : > { %1181 = shalt.err (!%p1178_p8)
}
 0x242   : > { %997 = dma.vmem_to_hbm [thread:$0]  (%p1516_p1), %s1436_s10, 128, %s1434_s19, %s680_s13  }
 0x243 PF: > { %p1018_p11 = scmp.ge.s32.totalorder %s1228_s18, 2  ;;  %s718_s5 = sand.u32 1, %s1216_s15  }
 0x244   : > { %p1517_p13 = scmp.ne.s32.totalorder %s1508_s26, 0  ;;  %s719_s7 = scalar_lea.sflag [#allocation4], %s718_s5 }
 0x246   : > { %p1008_p5 = pnand %p1018_p11, %p1517_p13 }
 0x248   : > { %1207 = dma.done.wait (!%p1008_p5), %s719_s7, 128  }
 0x249   : > { %1209 = vsyncadd (!%p1008_p5), %s719_s7, 4294967168  ;;  %s728_s9 = scalar_lea.sflag [#allocation9], %s718_s5 }
 0x24a   : > { %1211 = dma.done.wait (!%p1008_p5), %s728_s9, 128  }
 0x24b   : > { %1213 = vsyncadd (!%p1008_p5), %s728_s9, 4294967168  ;;  %p20_p1 = scmp.ge.s32.totalorder %s1294_s21, 4   ;;  %s1518_s15 = smov %s1220_s16 }
 0x24c   : > { %s1519_s16 = smov %s1224_s17  ;;  %s1520_s17 = smov %s1305_s24 }
 0x24d   : > { %s1521_s18 = smov %s1294_s21  ;;  %22 = sbr.rel (!%p20_p1) target bundleno = 7 (0x7), region = 93 }
 0x254   :  { %733 = vsyncpa [#allocation3], 1 }
 0x255   :  { %735 = vsyncpa [#allocation3 + $0x1], 1 }
 0x256   :  { %736 = vsyncpa [#allocation6], 1 }
 0x257   :  { %737 = vsyncpa [#allocation4], 1 }
 0x258   :  { %739 = vsyncpa [#allocation4 + $0x1], 1 }
 0x259   :  { %740 = vsyncpa [#allocation9], 1 }
 0x25a   :  { %742 = vsyncpa [#allocation9 + $0x1], 1 }

</bundles_post_ra>
